<compile_context>
chip_gen: v7x
topology: tpu7x:2x2x1
jax: 0.10.0
libtpu: 0.0.40
codegen_flags: <defaults>
</compile_context>

<pallas_src>
import jax
import jax.numpy as jnp
from jax.experimental import pallas as pl
from jax.experimental.pallas import tpu as pltpu

EPS = 1e-3   # BatchNorm2d(eps=0.001)
TN = 256     # Cout tile width


def conv_bn_kernel(x_ref, w_ref, gamma_ref, beta_ref, o_ref):
    # x_ref:     (Cin, M)   -- channels-first slab (free reshape of NCHW, N==1)
    # w_ref:     (Cin, TN)  -- one Cout tile of the 1x1-conv weight
    # gamma/beta:(1, TN)    -- BN affine params for this tile
    # o_ref:     (M, TN)
    y = jax.lax.dot_general(
        x_ref[...], w_ref[...],
        dimension_numbers=(((0,), (0,)), ((), ())),   # contract over Cin
        preferred_element_type=jnp.float32,
    )                                                  # (M, TN), f32 accum

    inv_m = 1.0 / y.shape[0]
    # BatchNorm training mode: biased batch stats over the N*H*W axis,
    # computed per output channel (column).  Cout tiles are independent.
    mean = jnp.sum(y, axis=0, keepdims=True) * inv_m
    centered = y - mean
    var = jnp.sum(centered * centered, axis=0, keepdims=True) * inv_m
    inv_std = jax.lax.rsqrt(var + EPS)

    o_ref[...] = (centered * inv_std * gamma_ref[...] + beta_ref[...]).astype(o_ref.dtype)


def conv2d_batchnorm(x_nchw, w_oi, gamma, beta):
    """x_nchw: (N, Cin, H, W); w_oi: (Cout, Cin) 1x1 conv weight;
    gamma/beta: (Cout,).  Returns (N, Cout, H, W)."""
    N, Cin, H, W = x_nchw.shape
    Cout = w_oi.shape[0]
    M = N * H * W

    # NCHW -> (Cin, M).  For N == 1 this is a pure reshape (no data movement).
    if N == 1:
        x_cm = x_nchw.reshape(Cin, M)
    else:
        x_cm = jnp.transpose(x_nchw, (1, 0, 2, 3)).reshape(Cin, M)

    # Pad Cout up to a multiple of TN so every weight load / output store is
    # lane-dense.  Padded channels normalize to beta (=0 padded) and are
    # sliced off; real-channel stats are column-wise and thus unaffected.
    cout_pad = pl.cdiv(Cout, TN) * TN
    pad = cout_pad - Cout
    w_mat = jnp.pad(jnp.transpose(w_oi, (1, 0)), ((0, 0), (0, pad)))   # (Cin, cout_pad)
    gamma2 = jnp.pad(gamma.reshape(1, Cout), ((0, 0), (0, pad)))
    beta2 = jnp.pad(beta.reshape(1, Cout), ((0, 0), (0, pad)))

    grid_spec = pltpu.PrefetchScalarGridSpec(
        num_scalar_prefetch=0,
        grid=(cout_pad // TN,),
        in_specs=[
            pl.BlockSpec((Cin, M), lambda j: (0, 0)),    # X: small, resident across tiles
            pl.BlockSpec((Cin, TN), lambda j: (0, j)),   # weight tile, pipelined
            pl.BlockSpec((1, TN), lambda j: (0, j)),
            pl.BlockSpec((1, TN), lambda j: (0, j)),
        ],
        out_specs=pl.BlockSpec((M, TN), lambda j: (0, j)),
    )

    out_mat = pl.pallas_call(
        conv_bn_kernel,
        out_shape=jax.ShapeDtypeStruct((M, cout_pad), x_nchw.dtype),
        grid_spec=grid_spec,
        compiler_params=pltpu.CompilerParams(
            # Cout tiles are fully independent -> megacore sharding on v7x.
            dimension_semantics=("parallel",),
        ),
    )(x_cm, w_mat, gamma2, beta2)

    out_mat = out_mat[:, :Cout]                                  # drop padding
    # (M, Cout) -> NCHW
    return jnp.transpose(out_mat.reshape(N, H, W, Cout), (0, 3, 1, 2))


def reference(x_nchw, w_oi, gamma, beta):
    # pure-JAX reference for sanity checking
    N, Cin, H, W = x_nchw.shape
    Cout = w_oi.shape[0]
    x_mat = jnp.transpose(x_nchw, (0, 2, 3, 1)).reshape(-1, Cin)
    y = x_mat @ w_oi.T
    mean = jnp.mean(y, axis=0, keepdims=True)
    var = jnp.mean((y - mean) ** 2, axis=0, keepdims=True)
    out = (y - mean) / jnp.sqrt(var + EPS) * gamma.reshape(1, -1) + beta.reshape(1, -1)
    return jnp.transpose(out.reshape(N, H, W, Cout), (0, 3, 1, 2))


if __name__ == "__main__":
    # Shapes implied by the module's forward: x654 = randn([1, 344, 7, 7])
    N, Cin, H, W = 1, 344, 7, 7
    Cout = 2064

    key = jax.random.PRNGKey(0)
    kx, kw = jax.random.split(key)

    x = jax.random.normal(kx, (N, Cin, H, W), dtype=jnp.float32)
    # Conv2d(344, 2064, 1x1, bias=False) weight, deterministic init (kaiming-ish scale)
    w = jax.random.normal(kw, (Cout, Cin), dtype=jnp.float32) * (1.0 / jnp.sqrt(Cin))
    # BatchNorm2d affine params: PyTorch default init (gamma=1, beta=0)
    gamma = jnp.ones((Cout,), dtype=jnp.float32)
    beta = jnp.zeros((Cout,), dtype=jnp.float32)

    out = conv2d_batchnorm(x, w, gamma, beta)
    out = jax.block_until_ready(out)

    ref = reference(x, w, gamma, beta)
    assert out.shape == (N, Cout, H, W)
    assert jnp.allclose(out, ref, atol=1e-3, rtol=1e-3)

    print("KERNEL_OK")
</pallas_src>

<mosaic_0001>
module attributes {stable_mosaic.version = 11 : i64} {
  func.func @conv_bn_kernel(%arg0: i32, %arg1: memref<344x49xf32, #tpu.memory_space<vmem>>, %arg2: memref<344x256xf32, #tpu.memory_space<vmem>>, %arg3: memref<1x256xf32, #tpu.memory_space<vmem>>, %arg4: memref<1x256xf32, #tpu.memory_space<vmem>>, %arg5: memref<49x256xf32, #tpu.memory_space<vmem>>) attributes {dimension_semantics = [#tpu.dimension_semantics<parallel>], iteration_bounds = array<i64: 9>, scalar_prefetch = 0 : i64, scratch_operands = 0 : i64, tpu.core_type = #tpu.core_type<tc>, window_params = [{pipeline_mode = #tpu.pipeline_mode<synchronous>, transform_indices = @transform_0, window_bounds = array<i64: 344, 49>}, {transform_indices = @transform_1, window_bounds = array<i64: 344, 256>}, {transform_indices = @transform_2, window_bounds = array<i64: 1, 256>}, {transform_indices = @transform_3, window_bounds = array<i64: 1, 256>}, {transform_indices = @transform_4, window_bounds = array<i64: 49, 256>}]} {
    %c0 = arith.constant 0 : index
    %c0_0 = arith.constant 0 : index
    %0 = vector.load %arg1[%c0, %c0_0] : memref<344x49xf32, #tpu.memory_space<vmem>>, vector<344x49xf32>
    %c0_1 = arith.constant 0 : index
    %c0_2 = arith.constant 0 : index
    %1 = vector.load %arg2[%c0_1, %c0_2] : memref<344x256xf32, #tpu.memory_space<vmem>>, vector<344x256xf32>
    %cst = arith.constant dense<0.000000e+00> : vector<49x256xf32>
    %2 = tpu.matmul %0, %1, %cst {dimension_numbers = #tpu.dot_dimension_numbers<[0], [0], [1], [1], [0, 1, 1, 1], [], []>} : vector<344x49xf32>, vector<344x256xf32>, vector<49x256xf32> -> vector<49x256xf32>
    %cst_3 = arith.constant dense<0.000000e+00> : vector<256xf32>
    %3 = vector.multi_reduction <add>, %2, %cst_3 [0] : vector<49x256xf32> to vector<256xf32>
    %4 = vector.shape_cast %3 : vector<256xf32> to vector<1x256xf32>
    %cst_4 = arith.constant 0.0204081628 : f32
    %5 = vector.broadcast %cst_4 : f32 to vector<1x256xf32>
    %6 = arith.mulf %4, %5 : vector<1x256xf32>
    %7 = vector.broadcast %6 : vector<1x256xf32> to vector<49x256xf32>
    %8 = arith.subf %2, %7 : vector<49x256xf32>
    %9 = arith.mulf %8, %8 : vector<49x256xf32>
    %cst_5 = arith.constant dense<0.000000e+00> : vector<256xf32>
    %10 = vector.multi_reduction <add>, %9, %cst_5 [0] : vector<49x256xf32> to vector<256xf32>
    %11 = vector.shape_cast %10 : vector<256xf32> to vector<1x256xf32>
    %cst_6 = arith.constant 0.0204081628 : f32
    %12 = vector.broadcast %cst_6 : f32 to vector<1x256xf32>
    %13 = arith.mulf %11, %12 : vector<1x256xf32>
    %cst_7 = arith.constant 1.000000e-03 : f32
    %14 = vector.broadcast %cst_7 : f32 to vector<1x256xf32>
    %15 = arith.addf %13, %14 : vector<1x256xf32>
    %16 = math.rsqrt %15 : vector<1x256xf32>
    %17 = vector.broadcast %16 : vector<1x256xf32> to vector<49x256xf32>
    %18 = arith.mulf %8, %17 : vector<49x256xf32>
    %c0_8 = arith.constant 0 : index
    %c0_9 = arith.constant 0 : index
    %19 = vector.load %arg3[%c0_8, %c0_9] : memref<1x256xf32, #tpu.memory_space<vmem>>, vector<1x256xf32>
    %20 = vector.broadcast %19 : vector<1x256xf32> to vector<49x256xf32>
    %21 = arith.mulf %18, %20 : vector<49x256xf32>
    %c0_10 = arith.constant 0 : index
    %c0_11 = arith.constant 0 : index
    %22 = vector.load %arg4[%c0_10, %c0_11] : memref<1x256xf32, #tpu.memory_space<vmem>>, vector<1x256xf32>
    %23 = vector.broadcast %22 : vector<1x256xf32> to vector<49x256xf32>
    %24 = arith.addf %21, %23 : vector<49x256xf32>
    %c0_12 = arith.constant 0 : index
    %c0_13 = arith.constant 0 : index
    %25 = vector.load %arg5[%c0_12, %c0_13] : memref<49x256xf32, #tpu.memory_space<vmem>>, vector<49x256xf32>
    tpu.vector_store %arg5[%c0_12, %c0_13], %24 {strides = array<i32>} : memref<49x256xf32, #tpu.memory_space<vmem>>, vector<49x256xf32>,
    return
  }
  func.func @transform_0(%arg0: i32) -> (i32, i32) {
    %c0_i32 = arith.constant 0 : i32
    %c0_i32_0 = arith.constant 0 : i32
    %c0_i32_1 = arith.constant 0 : i32
    return %c0_i32, %c0_i32_0 : i32, i32
  }
  func.func @transform_1(%arg0: i32) -> (i32, i32) {
    %c0_i32 = arith.constant 0 : i32
    %c0_i32_0 = arith.constant 0 : i32
    return %c0_i32, %arg0 : i32, i32
  }
  func.func @transform_2(%arg0: i32) -> (i32, i32) {
    %c0_i32 = arith.constant 0 : i32
    %c0_i32_0 = arith.constant 0 : i32
    return %c0_i32, %arg0 : i32, i32
  }
  func.func @transform_3(%arg0: i32) -> (i32, i32) {
    %c0_i32 = arith.constant 0 : i32
    %c0_i32_0 = arith.constant 0 : i32
    return %c0_i32, %arg0 : i32, i32
  }
  func.func @transform_4(%arg0: i32) -> (i32, i32) {
    %c0_i32 = arith.constant 0 : i32
    %c0_i32_0 = arith.constant 0 : i32
    return %c0_i32, %arg0 : i32, i32
  }
}

</mosaic_0001>

<bundles_post_ra>
// kernel: tpu_custom_call.1
= control target key start
LH: loop header
LB: loop body
LE: loop exit
PB: predicated region body
PF: predicated region fallthrough
CT: control target
= control target key end

     0   :  { %s2097_s0 = inlined_call_operand.vmem [shape: f32[344,49], index: 0, kind: input, shape index: {}]   ;;  %s2098_s1 = inlined_call_operand.hbm [shape: f32[344,2304], index: 1, kind: input, shape index: {}]   ;;  %s2099_s2 = inlined_call_operand.hbm [shape: f32[1,2304], index: 2, kind: input, shape index: {}]   ;;  %s2100_s3 = inlined_call_operand.hbm [shape: f32[1,2304], index: 3, kind: input, shape index: {}]   ;;  %s2101_s4 = inlined_call_operand.hbm [shape: f32[49,2304], index: 4, kind: output, shape index: {}]  }
   0x1   :  { %2109 = sst [smem:[#allocation15_spill]] %s2098_s1 }
   0x2   :  { %2110 = sst [smem:[#allocation16_spill]] %s2099_s2 }
   0x3   :  { %9 = vsyncpa [#allocation3], 0 }
   0x4   :  { %11 = vsyncpa [#allocation3 + $0x1], 0 }
   0x5   :  { %12 = vsyncpa [#allocation6], 0 }
   0x6   :  { %14 = vsyncpa [#allocation6 + $0x1], 0 }
   0x7   :  { %15 = vsyncpa [#allocation4], 0 }
   0x8   :  { %17 = vsyncpa [#allocation4 + $0x1], 0  ;;  %s1515_s15 = smov 0   ;;  %s1517_s16 = smov 0  }
   0x9   :  { %s1519_s17 = smov 0   ;;  %s1521_s18 = smov 0  }
   0xa LB: > { %2111 = sst [smem:[#allocation12_spill]] %s1473_s17  ;;  %s1536_s19 = sadd.s32 4294967295, %s1477_s18   ;;  %s1477_s18 = sphi %s1521_s18, %s2128_s18   ;;  %s1473_s17 = sphi %s1519_s17, %s2130_s17   ;;  %s1469_s16 = sphi %s1517_s16, %s2132_s16   ;;  %s1465_s15 = sphi %s1515_s15, %s2131_s15  }
   0xb   : > { %s1053_s20 = sadd.s32 4294967294, %s1477_s18   ;;  %s1540_s21 = sadd.s32 1, %s1477_s18  }
   0xc   : > { %2112 = sst [smem:[#allocation13_spill]] %s1540_s21  ;;  %s51_s22 = sadd.s32 1, %s1473_s17 }
   0xd   : > { %s48_s23 = ssub.s32 %s1477_s18, %s1540_s21  ;;  %p58_p0 = scmp.ne.s32.totalorder %s1473_s17, %s1469_s16 }
   0xe   : > { %p49_p1 = scmp.eq.s32.totalorder %s48_s23, 0  ;;  %p59_p2 = scmp.eq.s32.totalorder %s1477_s18, 0 }
   0xf   : > { %p64_p3 = scmp.ne.s32.totalorder %s1469_s16, %s1465_s15  ;;  %p65_p4 = scmp.eq.s32.totalorder %s1536_s19, 0 }
  0x10   : > { %s1552_s24 = scalar_select %p49_p1, %s1473_s17, %s51_s22  }
  0x11   : > { %p60_p5 = por %p59_p2, %p58_p0  ;;  %p1554_p6 = por %p65_p4, %p64_p3 }
  0x12   : > { %2113 = sst [smem:[#allocation14_spill]] %s1552_s24  ;;  %p140_p7 = scmp.eq.s32.totalorder %s1536_s19, 8 }
  0x13   : > { %s2114_s25 = scalar_select %p1554_p6, 1, 0 }
  0x14   : > { %p146_p8 = scmp.eq.s32.totalorder %s1053_s20, 8  ;;  %p1205_p9 = scmp.lt.s32.totalorder %s1477_s18, 9 }
  0x15   : > { %p1560_p10 = por %p140_p7, %p58_p0  ;;  %s1569_s28 = sand.u32 1, %s1473_s17  }
  0x16   : > { %p1564_p11 = por %p146_p8, %p64_p3  ;;  %p1571_p12 = pnand %p1205_p9, %p60_p5 }
  0x17   : > { %s2115_s26 = scalar_select %p1560_p10, 1, 0 }
  0x18   : > { %s2116_s27 = scalar_select %p1564_p11, 1, 0 }
  0x19   : > { %s2117_s29 = scalar_select %p1571_p12, 1, 0 }
  0x1a   : > { %s1180_s30 = smul.u32 688, %s1569_s28  ;;  %s190_s5 = sand.u32 1, %s1477_s18  }
  0x1b   : > { %s2104_s8 = sshll.u32 %s1569_s28, 1  ;;  %s1079_s9 = sshll.u32 %s1477_s18, 5 }
  0x1c   : > { %s173_s6 = scalar_lea.vmem [#allocation2], %s1180_s30  ;;  %s194_s10 = scalar_lea.vmem [#allocation5], %s2104_s8 }
  0x1d   : > { %s180_s7 = sshll.u32 %s173_s6, 4  ;;  %s202_s11 = sshll.u32 %s194_s10, 4  ;;  %s1578_s7 = int_to_ptr.vmem [resolvable:$true] %s180_s7  ;;  %s1590_s11 = int_to_ptr.vmem [resolvable:$true] %s202_s11 }
  0x1e   : > { %s2118_s2 = sld [smem:[#allocation16_spill]]  ;;  %s1592_s20 = scalar_lea.sflag [#allocation6], %s190_s5 }
  0x1f   : > { %p1598_p0 = pneg %p1571_p12 }
  0x24   : > { %s1588_s14 = scalar_lea.hbm %s2118_s2, %s1079_s9  ;;  %s1322_s10 = scalar_lea.hbm %s2118_s2, 288 }
  0x25   : > { %s1317_s22 = scalar_lea.hbm %s1588_s14, 32  ;;  %p1323_p3 = scmp.lt.u32.totalorder %s1588_s14, %s2118_s2 }
  0x26   : > { %p1318_p13 = scmp.ne.s32.totalorder %s1588_s14, %s1317_s22  ;;  %p1324_p4 = scmp.lt.u32.totalorder %s1322_s10, %s1317_s22 }
  0x27   : > { %p1326_p7 = scmp.lt.u32.totalorder %s1317_s22, %s1588_s14 }
  0x28   : > { %p1320_p1 = pnand %p1598_p0, %p1318_p13  ;;  %p1325_p5 = por %p1324_p4, %p1323_p3 }
  0x2a   : > { %p1321_p2 = pneg %p1320_p1  ;;  %p1327_p8 = por %p1326_p7, %p1325_p5 }
  0x2c   : > { %p1328_p9 = pnand %p1327_p8, %p1321_p2 }
  0x2e   : > { %1331 = shalt.err (!%p1328_p9)
}
  0x2f   : > { %s1332_s5 = scalar_lea.vmem %s1590_s11, 32  ;;  %s1479_s30 = smov [#allocation5]  }
  0x30   : > { %p1333_p13 = scmp.ne.s32.totalorder %s1590_s11, %s1332_s5  ;;  %s1337_s6 = sshll.u32 %s1479_s30, 4  ;;  %s1338_s6 = int_to_ptr.vmem [resolvable:$false] %s1337_s6 }
  0x31   : > { %s1339_s12 = scalar_lea.vmem %s1338_s6, 64  ;;  %p1340_p10 = scmp.lt.s32.totalorder %s1590_s11, %s1338_s6 }
  0x32   : > { %p1335_p1 = pnand %p1333_p13, %p1598_p0  ;;  %p1341_p6 = scmp.lt.s32.totalorder %s1339_s12, %s1332_s5 }
  0x34   : > { %p1336_p11 = pneg %p1335_p1  ;;  %p1342_p3 = por %p1341_p6, %p1340_p10 }
  0x36   : > { %p1343_p4 = pnand %p1342_p3, %p1336_p11 }
  0x38   : > { %1346 = shalt.err (!%p1343_p4)
}
  0x39   : > { %1197 = dma.hbm_to_vmem [thread:$0]  (!%p1571_p12), %s1588_s14, 32, %s1590_s11, %s1592_s20  }
  0x3a   : > { %s1627_s13 = scalar_lea.hbm %s2100_s3, %s1079_s9  ;;  %p1064_p6 = scmp.ge.s32.totalorder %s1477_s18, 1 }
  0x3b   : > { %p226_p10 = scmp.lt.s32.totalorder %s1477_s18, 10  ;;  %s1078_s5 = sshll.u32 %s1477_s18, 8 }
  0x3c   : > { %s2121_s1 = sld [smem:[#allocation15_spill]]  ;;  %s170_s11 = scalar_lea.sflag [#allocation3], %s1569_s28 }
  0x3d   : > { %p1632_p11 = pnand %p1064_p6, %p226_p10 }
  0x3f   : > { %s2120_s30 = scalar_select %p1632_p11, 1, 0 }
  0x42   : > { %s1639_s8 = scalar_lea.hbm %s2121_s1, %s1078_s5  ;;  %s1352_s10 = scalar_lea.hbm %s2121_s1, 99072 }
  0x43   : > { %s1347_s14 = scalar_lea.hbm %s1639_s8, 11008  ;;  %p1353_p8 = scmp.lt.u32.totalorder %s1639_s8, %s2121_s1 }
  0x44   : > { %p1348_p2 = scmp.ne.s32.totalorder %s1639_s8, %s1347_s14  ;;  %p1354_p9 = scmp.lt.u32.totalorder %s1352_s10, %s1347_s14 }
  0x45   : > { %p1356_p1 = scmp.lt.u32.totalorder %s1347_s14, %s1639_s8 }
  0x46   : > { %p1350_p5 = pnand %p1348_p2, %p1598_p0  ;;  %p1355_p13 = por %p1354_p9, %p1353_p8 }
  0x48   : > { %p1351_p7 = pneg %p1350_p5  ;;  %p1357_p3 = por %p1356_p1, %p1355_p13 }
  0x4a   : > { %p1358_p4 = pnand %p1357_p3, %p1351_p7 }
  0x4c   : > { %1361 = shalt.err (!%p1358_p4)
}
  0x4d   : > { %s1362_s5 = scalar_lea.vmem %s1578_s7, 11008  ;;  %s1480_s6 = smov [#allocation2]  }
  0x4e   : > { %p1363_p6 = scmp.ne.s32.totalorder %s1578_s7, %s1362_s5  ;;  %s1367_s12 = sshll.u32 %s1480_s6, 4  ;;  %s1368_s12 = int_to_ptr.vmem [resolvable:$false] %s1367_s12 }
  0x4f   : > { %s1369_s2 = scalar_lea.vmem %s1368_s12, 22016  ;;  %p1370_p5 = scmp.lt.s32.totalorder %s1578_s7, %s1368_s12 }
  0x50   : > { %p1365_p10 = pnand %p1363_p6, %p1598_p0  ;;  %p1371_p11 = scmp.lt.s32.totalorder %s1369_s2, %s1362_s5 }
  0x52   : > { %p1366_p2 = pneg %p1365_p10  ;;  %p1372_p8 = por %p1371_p11, %p1370_p5 }
  0x54   : > { %p1373_p9 = pnand %p1372_p8, %p1366_p2 }
  0x56   : > { %1376 = shalt.err (!%p1373_p9)
}
  0x57   : > { %s1481_s24 = smov 2304   ;;  %s1482_s14 = smov 256  }
  0x58   : > { %s1483_s9 = smov 16   ;;  %s2122_s22 = sshll.u32 %s1569_s28, 1 }
  0x59   : > { %1194 = dma.hbm_to_vmem [thread:$0]  (!%p1571_p12), %s1639_s8, 11008, %s1578_s7, %s170_s11, %s1481_s24, %s1482_s14, %s1483_s9  }
  0x5a   : > { %s213_s10 = scalar_lea.vmem [#allocation7], %s2122_s22  ;;  %s1377_s6 = scalar_lea.hbm %s1627_s13, 32 }
  0x5b   : > { %s221_s5 = sshll.u32 %s213_s10, 4  ;;  %p1378_p11 = scmp.ne.s32.totalorder %s1627_s13, %s1377_s6  ;;  %s222_s5 = int_to_ptr.vmem [resolvable:$true] %s221_s5 }
  0x5c   : > { %s1382_s1 = scalar_lea.hbm %s2100_s3, 288  ;;  %p1383_p1 = scmp.lt.u32.totalorder %s1627_s13, %s2100_s3 }
  0x5d   : > { %p1380_p7 = pnand %p1378_p11, %p1598_p0  ;;  %p1384_p3 = scmp.lt.u32.totalorder %s1382_s1, %s1377_s6 }
  0x5e   : > { %p1386_p6 = scmp.lt.u32.totalorder %s1377_s6, %s1627_s13 }
  0x5f   : > { %p1381_p13 = pneg %p1380_p7  ;;  %p1385_p4 = por %p1384_p3, %p1383_p1 }
  0x61   : > { %p1387_p10 = por %p1386_p6, %p1385_p4 }
  0x63   : > { %p1388_p2 = pnand %p1387_p10, %p1381_p13 }
  0x65   : > { %1391 = shalt.err (!%p1388_p2)
}
  0x66   : > { %s1392_s28 = scalar_lea.vmem %s222_s5, 32  ;;  %s1484_s7 = smov [#allocation7]  }
  0x67   : > { %p1393_p5 = scmp.ne.s32.totalorder %s222_s5, %s1392_s28  ;;  %s1397_s8 = sshll.u32 %s1484_s7, 4  ;;  %s1398_s8 = int_to_ptr.vmem [resolvable:$false] %s1397_s8 }
  0x68   : > { %s1399_s11 = scalar_lea.vmem %s1398_s8, 64  ;;  %p1400_p11 = scmp.lt.s32.totalorder %s222_s5, %s1398_s8 }
  0x69   : > { %p1395_p8 = pnand %p1393_p5, %p1598_p0  ;;  %p1401_p7 = scmp.lt.s32.totalorder %s1399_s11, %s1392_s28 }
  0x6b   : > { %p1396_p9 = pneg %p1395_p8  ;;  %p1402_p12 = por %p1401_p7, %p1400_p11 }
  0x6d   : > { %p1403_p1 = pnand %p1402_p12, %p1396_p9 }
  0x6f   : > { %1406 = shalt.err (!%p1403_p1)
}
  0x70   : > { %p2123_p3 = scmp.ne.s32.totalorder %s2117_s29, 0  ;;  %p2124_p13 = scmp.ne.s32.totalorder %s2120_s30, 0 }
  0x71   : > { %s1688_s1 = sand.u32 (!%p2124_p13), 1, %s1469_s16   ;;  %p2125_p12 = scmp.ne.s32.totalorder (!%p2124_p13), %s2114_s25, 0 }
  0x72   : > { %1200 = dma.hbm_to_vmem [thread:$0]  (!%p2123_p3), %s1627_s13, 32, %s222_s5, %s1592_s20  }
  0x73   : > { %230 = sbr.rel (%p2124_p13) target bundleno = 590 (0x24e), region = 36  ;;  %s233_s21 = scalar_lea.sflag (!%p2124_p13), [#allocation3], %s1688_s1 }
  0x74   : > { %s1181_s17 = smul.u32 (!%p2124_p13), 688, %s1688_s1 }
  0x76   : > { %s1692_s23 = scalar_lea.vmem (!%p2124_p13), [#allocation2], %s1181_s17 }
  0x7a   : > { %1452 = dma.done.wait (%p2125_p12), %s233_s21, 11008  }
  0x7b   : > { %1454 = vsyncadd (%p2125_p12), %s233_s21, 4294956288  ;;  %s241_s29 = sand.u32 1, %s1536_s19   ;;  %s1065_s20 = sshll.u32 %s1688_s1, 1 }
  0x7c   : > { %s242_s13 = scalar_lea.sflag [#allocation6], %s241_s29  ;;  %s1702_s30 = scalar_lea.vmem [#allocation5], %s1065_s20 }
  0x7d   : > { %1456 = dma.done.wait (%p2125_p12), %s242_s13, 64  }
  0x7e   : > { %1458 = vsyncadd (%p2125_p12), %s242_s13, 4294967232  ;;  %v293_v0 = vld [vmem:[%s2097_s0] sm:$0xff]  ;;  %v294_v4 = vld [vmem:[%s2097_s0 + $0x8] sm:$0xff]  ;;  %v1485_v10 = vmov 0.0   ;;  %vm518_vm0 = vcmask 719872   ;;  %vm759_vm1 = vcmask 1040384  }
  0x7f   : > { %v309_v1 = vld [vmem:[%s2097_s0 + $0x80] sm:$0xff]  ;;  %v310_v5 = vld [vmem:[%s2097_s0 + $0x88] sm:$0xff]  ;;  %v295_v8 = vld [vmem:[%s2097_s0 + $0x10] sm:$0xff]  ;;  %711 = vmatprep.mubr.f32.mxu0 %v1485_v10  ;;  %s1182_s17 = smul.u32 112, %s1688_s1  ;;  %s924_s24 = scalar_lea.sflag [#allocation4], %s1688_s1 }
  0x80   : > { %v325_v2 = vld [vmem:[%s2097_s0 + $0x100] sm:$0xff]  ;;  %v1246_v3 = vpack.i.bf16 %v293_v0, %v309_v1  ;;  %v326_v6 = vld [vmem:[%s2097_s0 + $0x108] sm:$0xff]  ;;  %v1248_v7 = vpack.i.bf16 %v294_v4, %v310_v5  ;;  %v311_v9 = vld [vmem:[%s2097_s0 + $0x90] sm:$0xff]  ;;  %p2126_p4 = scmp.ne.s32.totalorder %s2115_s26, 0  ;;  %s1486_s9 = smov [#allocation8]  }
  0x81   : > { %486 = vxpose.xlu1.b32.start [1/11] (short) (narrow) %v325_v2, 56  ;;  %v327_v11 = vld [vmem:[%s2097_s0 + $0x110] sm:$0xff]  ;;  %v1250_v12 = vpack.i.bf16 %v295_v8, %v311_v9  ;;  %v296_v13 = vld [vmem:[%s2097_s0 + $0x18] sm:$0xff]  ;;  %v297_v17 = vld [vmem:[%s2097_s0 + $0x20] sm:$0xff]  ;;  %s1411_s22 = sshll.u32 %s1486_s9, 4  ;;  %s1412_s22 = int_to_ptr.vmem [resolvable:$false] %s1411_s22 }
  0x82   : > { %1247 = vxpose.xlu0.b32.start [1/16] (narrow) %v1246_v3, 56  ;;  %v312_v14 = vld [vmem:[%s2097_s0 + $0x98] sm:$0xff]  ;;  %v313_v18 = vld [vmem:[%s2097_s0 + $0xa0] sm:$0xff]  ;;  %v298_v20 = vld [vmem:[%s2097_s0 + $0x28] sm:$0xff]  ;;  %s1413_s10 = scalar_lea.vmem %s1412_s22, 3584 }
  0x83   : > { %v328_v15 = vld [vmem:[%s2097_s0 + $0x118] sm:$0xff]  ;;  %v1252_v16 = vpack.i.bf16 %v296_v13, %v312_v14  ;;  %v329_v19 = vld [vmem:[%s2097_s0 + $0x120] sm:$0xff]  ;;  %v314_v21 = vld [vmem:[%s2097_s0 + $0xa8] sm:$0xff]  ;;  %v1254_v24 = vpack.i.bf16 %v297_v17, %v313_v18 }
  0x84   : > { %v337_v22 = vld [vmem:[%s1692_s23 + $0x8] sm:$0xff]  ;;  %v339_v23 = vld [vmem:[%s1692_s23 + $0x18] sm:$0xff]  ;;  %v336_v26 = vld [vmem:[%s1692_s23] sm:$0xff]  ;;  %v1256_v38 = vpack.i.bf16 %v298_v20, %v314_v21 }
  0x85   : > { %487 = vxpose.xlu1.b32.cont [2/11] (short) (narrow) %v326_v6, 56  ;;  %v1082_v25 = vpack.c.bf16 %v339_v23, %v337_v22  ;;  %v338_v27 = vld [vmem:[%s1692_s23 + $0x10] sm:$0xff]  ;;  %v341_v28 = vld [vmem:[%s1692_s23 + $0x28] sm:$0xff]  ;;  %v343_v30 = vld [vmem:[%s1692_s23 + $0x38] sm:$0xff] }
  0x86   : > { %1249 = vxpose.xlu0.b32.cont [2/16] (narrow) %v1248_v7, 56  ;;  %v1084_v29 = vpack.c.bf16 %v338_v27, %v336_v26  ;;  %v340_v31 = vld [vmem:[%s1692_s23 + $0x20] sm:$0xff]  ;;  %v342_v32 = vld [vmem:[%s1692_s23 + $0x30] sm:$0xff]  ;;  %v1086_v33 = vpack.c.bf16 %v343_v30, %v341_v28  ;;  %v345_v34 = vld [vmem:[%s1692_s23 + $0x48] sm:$0xff] }
  0x87   : > { %1083 = vmatprep.subr.bf16.mxu1 %v1082_v25  ;;  %v347_v35 = vld [vmem:[%s1692_s23 + $0x58] sm:$0xff]  ;;  %v330_v36 = vld [vmem:[%s2097_s0 + $0x128] sm:$0xff]  ;;  %v1088_v37 = vpack.c.bf16 %v342_v32, %v340_v31  ;;  %v349_v44 = vld [vmem:[%s1692_s23 + $0x68] sm:$0xff] }
  0x88   : > { %1085 = vmatpush1.bf16.msra.mxu1 %v1084_v29  ;;  %v299_v39 = vld [vmem:[%s2097_s0 + $0x30] sm:$0xff]  ;;  %v1090_v40 = vpack.c.bf16 %v347_v35, %v345_v34  ;;  %v344_v41 = vld [vmem:[%s1692_s23 + $0x40] sm:$0xff]  ;;  %v346_v42 = vld [vmem:[%s1692_s23 + $0x50] sm:$0xff] }
  0x89   : > { %488 = vxpose.xlu1.b32.cont [3/11] (short) (narrow) %v327_v11, 56  ;;  %1087 = vmatprep.subr.bf16.mxu1 %v1086_v33  ;;  %v315_v43 = vld [vmem:[%s2097_s0 + $0xb0] sm:$0xff]  ;;  %v1092_v47 = vpack.c.bf16 %v346_v42, %v344_v41  ;;  %v300_v49 = vld [vmem:[%s2097_s0 + $0x38] sm:$0xff]  ;;  %v301_v57 = vld [vmem:[%s2097_s0 + $0x40] sm:$0xff] }
  0x8a   : > { %1251 = vxpose.xlu0.b32.cont [3/16] (narrow) %v1250_v12, 56  ;;  %v351_v45 = vld [vmem:[%s1692_s23 + $0x78] sm:$0xff]  ;;  %v1258_v48 = vpack.i.bf16 %v299_v39, %v315_v43  ;;  %v348_v51 = vld [vmem:[%s1692_s23 + $0x60] sm:$0xff]  ;;  %v350_v52 = vld [vmem:[%s1692_s23 + $0x70] sm:$0xff] }
  0x8b   : > { %v331_v46 = vld [vmem:[%s2097_s0 + $0x130] sm:$0xff]  ;;  %v1094_v50 = vpack.c.bf16 %v351_v45, %v349_v44  ;;  %v316_v53 = vld [vmem:[%s2097_s0 + $0xb8] sm:$0xff]  ;;  %v1096_v58 = vpack.c.bf16 %v350_v52, %v348_v51  ;;  %v317_v60 = vld [vmem:[%s2097_s0 + $0xc0] sm:$0xff] }
  0x8c   : > { %1089 = vmatpush1.bf16.msra.mxu1 %v1088_v37  ;;  %v353_v54 = vld [vmem:[%s1692_s23 + $0x88] sm:$0xff]  ;;  %v355_v55 = vld [vmem:[%s1692_s23 + $0x98] sm:$0xff]  ;;  %v332_v56 = vld [vmem:[%s2097_s0 + $0x138] sm:$0xff]  ;;  %v1260_v59 = vpack.i.bf16 %v300_v49, %v316_v53  ;;  %v1262_v14 = vpack.i.bf16 %v301_v57, %v317_v60 }
  0x8d   : > { %489 = vxpose.xlu1.b32.cont [4/11] (short) (narrow) %v328_v15, 56  ;;  %1091 = vmatprep.subr.bf16.mxu1 %v1090_v40  ;;  %v1098_v61 = vpack.c.bf16 %v355_v55, %v353_v54  ;;  %v352_v62 = vld [vmem:[%s1692_s23 + $0x80] sm:$0xff]  ;;  %v354_v63 = vld [vmem:[%s1692_s23 + $0x90] sm:$0xff]  ;;  %v333_v0 = vld [vmem:[%s2097_s0 + $0x140] sm:$0xff] }
  0x8e   : > { %1253 = vxpose.xlu0.b32.cont [4/16] (narrow) %v1252_v16, 56  ;;  %v357_v1 = vld [vmem:[%s1692_s23 + $0xa8] sm:$0xff]  ;;  %v359_v2 = vld [vmem:[%s1692_s23 + $0xb8] sm:$0xff]  ;;  %v400_v5 = vld [vmem:[%s1692_s23 + $0x200] sm:$0xff]  ;;  %v1100_v8 = vpack.c.bf16 %v354_v63, %v352_v62 }
  0x8f   : > { %v401_v3 = vld [vmem:[%s1692_s23 + $0x208] sm:$0xff]  ;;  %v403_v4 = vld [vmem:[%s1692_s23 + $0x218] sm:$0xff]  ;;  %v302_v6 = vld [vmem:[%s2097_s0 + $0x48] sm:$0xff]  ;;  %v1102_v15 = vpack.c.bf16 %v359_v2, %v357_v1 }
  0x90   : > { %1093 = vmatpush1.bf16.msra.mxu1 %v1092_v47  ;;  %v318_v7 = vld [vmem:[%s2097_s0 + $0xc8] sm:$0xff]  ;;  %v1146_v12 = vpack.c.bf16 %v403_v4, %v401_v3  ;;  %v361_v16 = vld [vmem:[%s1692_s23 + $0xc8] sm:$0xff]  ;;  %v363_v17 = vld [vmem:[%s1692_s23 + $0xd8] sm:$0xff] }
  0x91   : > { %490 = vxpose.xlu1.b32.cont [5/11] (short) (narrow) %v329_v19, 56  ;;  %1095 = vmatprep.subr.bf16.mxu1 %v1094_v50  ;;  %v356_v9 = vld [vmem:[%s1692_s23 + $0xa0] sm:$0xff]  ;;  %v358_v11 = vld [vmem:[%s1692_s23 + $0xb0] sm:$0xff]  ;;  %v405_v19 = vld [vmem:[%s1692_s23 + $0x228] sm:$0xff]  ;;  %v1264_v31 = vpack.i.bf16 %v302_v6, %v318_v7  ;;  %v1106_v32 = vpack.c.bf16 %v363_v17, %v361_v16 }
  0x92   : > { %1255 = vxpose.xlu0.b32.cont [5/16] (narrow) %v1254_v24, 56  ;;  %v402_v13 = vld [vmem:[%s1692_s23 + $0x210] sm:$0xff]  ;;  %1147 = vmatprep.subr.bf16.mxu0 %v1146_v12  ;;  %v407_v20 = vld [vmem:[%s1692_s23 + $0x238] sm:$0xff]  ;;  %v404_v21 = vld [vmem:[%s1692_s23 + $0x220] sm:$0xff]  ;;  %v1104_v27 = vpack.c.bf16 %v358_v11, %v356_v9 }
  0x93   : > { %v1148_v18 = vpack.c.bf16 %v402_v13, %v400_v5  ;;  %v406_v22 = vld [vmem:[%s1692_s23 + $0x230] sm:$0xff]  ;;  %v1150_v24 = vpack.c.bf16 %v407_v20, %v405_v19  ;;  %v303_v26 = vld [vmem:[%s2097_s0 + $0x50] sm:$0xff]  ;;  %v360_v28 = vld [vmem:[%s1692_s23 + $0xc0] sm:$0xff] }
  0x94   : > { %1097 = vmatpush1.bf16.msra.mxu1 %v1096_v58  ;;  %v334_v23 = vld [vmem:[%s2097_s0 + $0x148] sm:$0xff]  ;;  %v1152_v25 = vpack.c.bf16 %v406_v22, %v404_v21  ;;  %v409_v29 = vld [vmem:[%s1692_s23 + $0x248] sm:$0xff]  ;;  %v411_v30 = vld [vmem:[%s1692_s23 + $0x258] sm:$0xff] }
  0x95   : > { %491 = vxpose.xlu1.b32.cont [6/11] (short) (narrow) %v330_v36, 56  ;;  %1099 = vmatprep.subr.bf16.mxu1 %v1098_v61  ;;  %v362_v33 = vld [vmem:[%s1692_s23 + $0xd0] sm:$0xff]  ;;  %v1154_v34 = vpack.c.bf16 %v411_v30, %v409_v29  ;;  %v408_v35 = vld [vmem:[%s1692_s23 + $0x240] sm:$0xff]  ;;  %v319_v37 = vld [vmem:[%s2097_s0 + $0xd0] sm:$0xff] }
  0x96   : > { %1257 = vxpose.xlu0.b32.cont [6/16] (narrow) %v1256_v38, 56  ;;  %1149 = vmatpush1.bf16.msra.mxu0 %v1148_v18  ;;  %v410_v36 = vld [vmem:[%s1692_s23 + $0x250] sm:$0xff]  ;;  %v365_v38 = vld [vmem:[%s1692_s23 + $0xe8] sm:$0xff]  ;;  %v367_v39 = vld [vmem:[%s1692_s23 + $0xf8] sm:$0xff]  ;;  %v1266_v50 = vpack.i.bf16 %v303_v26, %v319_v37 }
  0x97   : > { %1151 = vmatprep.subr.bf16.mxu0 %v1150_v24  ;;  %v335_v40 = vld [vmem:[%s2097_s0 + $0x150] sm:$0xff]  ;;  %v1156_v41 = vpack.c.bf16 %v410_v36, %v408_v35  ;;  %v304_v44 = vld [vmem:[%s2097_s0 + $0x58] sm:$0xff]  ;;  %v1110_v51 = vpack.c.bf16 %v367_v39, %v365_v38  ;;  %v321_v4 = vld [vmem:[%s2097_s0 + $0xe0] sm:$0xff] }
  0x98   : > { %1101 = vmatpush1.bf16.msra.mxu1 %v1100_v8  ;;  %v413_v42 = vld [vmem:[%s1692_s23 + $0x268] sm:$0xff]  ;;  %v415_v43 = vld [vmem:[%s1692_s23 + $0x278] sm:$0xff]  ;;  %v320_v45 = vld [vmem:[%s2097_s0 + $0xd8] sm:$0xff] }
  0x99   : > { %492 = vxpose.xlu1.b32.cont [7/11] (short) (narrow) %v331_v46, 56  ;;  %1103 = vmatprep.subr.bf16.mxu1 %v1102_v15  ;;  %v1108_v46 = vpack.c.bf16 %v362_v33, %v360_v28  ;;  %v1158_v47 = vpack.c.bf16 %v415_v43, %v413_v42  ;;  %v414_v49 = vld [vmem:[%s1692_s23 + $0x270] sm:$0xff]  ;;  %v364_v52 = vld [vmem:[%s1692_s23 + $0xe0] sm:$0xff]  ;;  %v417_v54 = vld [vmem:[%s1692_s23 + $0x288] sm:$0xff]  ;;  %v1268_v63 = vpack.i.bf16 %v304_v44, %v320_v45 }
  0x9a   : > { %1259 = vxpose.xlu0.b32.cont [7/16] (narrow) %v1258_v48, 56  ;;  %1153 = vmatpush1.bf16.msra.mxu0 %v1152_v25  ;;  %v412_v48 = vld [vmem:[%s1692_s23 + $0x260] sm:$0xff]  ;;  %v366_v53 = vld [vmem:[%s1692_s23 + $0xf0] sm:$0xff]  ;;  %v369_v55 = vld [vmem:[%s1692_s23 + $0x108] sm:$0xff] }
  0x9b   : > { %1155 = vmatprep.subr.bf16.mxu0 %v1154_v34  ;;  %v419_v57 = vld [vmem:[%s1692_s23 + $0x298] sm:$0xff]  ;;  %v1160_v58 = vpack.c.bf16 %v414_v49, %v412_v48  ;;  %v416_v61 = vld [vmem:[%s1692_s23 + $0x280] sm:$0xff]  ;;  %v418_v62 = vld [vmem:[%s1692_s23 + $0x290] sm:$0xff] }
  0x9c   : > { %1105 = vmatpush1.bf16.msra.mxu1 %v1104_v27  ;;  %v1162_v60 = vpack.c.bf16 %v419_v57, %v417_v54  ;;  %v368_v2 = vld [vmem:[%s1692_s23 + $0x100] sm:$0xff]  ;;  %v370_v3 = vld [vmem:[%s1692_s23 + $0x110] sm:$0xff]  ;;  %v373_v5 = vld [vmem:[%s1692_s23 + $0x128] sm:$0xff]  ;;  %v1164_v7 = vpack.c.bf16 %v418_v62, %v416_v61 }
  0x9d   : > { %493 = vxpose.xlu1.b32.cont [8/11] (short) (narrow) %v332_v56, 56  ;;  %1107 = vmatprep.subr.bf16.mxu1 %v1106_v32  ;;  %v371_v56 = vld [vmem:[%s1692_s23 + $0x118] sm:$0xff]  ;;  %v306_v8 = vld [vmem:[%s2097_s0 + $0x68] sm:$0xff]  ;;  %v1116_v9 = vpack.c.bf16 %v370_v3, %v368_v2  ;;  %v421_v15 = vld [vmem:[%s1692_s23 + $0x2a8] sm:$0xff] }
  0x9e   : > { %1261 = vxpose.xlu0.b32.cont [8/16] (narrow) %v1260_v59, 56  ;;  %1157 = vmatpush1.bf16.msra.mxu0 %v1156_v41  ;;  %v1112_v59 = vpack.c.bf16 %v366_v53, %v364_v52  ;;  %v1114_v1 = vpack.c.bf16 %v371_v56, %v369_v55  ;;  %v375_v6 = vld [vmem:[%s1692_s23 + $0x138] sm:$0xff]  ;;  %v372_v13 = vld [vmem:[%s1692_s23 + $0x120] sm:$0xff]  ;;  %v377_v17 = vld [vmem:[%s1692_s23 + $0x148] sm:$0xff] }
  0x9f   : > { %1159 = vmatprep.subr.bf16.mxu0 %v1158_v47  ;;  %v1118_v12 = vpack.c.bf16 %v375_v6, %v373_v5  ;;  %v322_v16 = vld [vmem:[%s2097_s0 + $0xe8] sm:$0xff]  ;;  %v379_v18 = vld [vmem:[%s1692_s23 + $0x158] sm:$0xff]  ;;  %v381_v27 = vld [vmem:[%s1692_s23 + $0x168] sm:$0xff] }
  0xa0   : > { %1109 = vmatpush1.bf16.msra.mxu1 %v1108_v46  ;;  %v420_v20 = vld [vmem:[%s1692_s23 + $0x2a0] sm:$0xff]  ;;  %v1272_v21 = vpack.i.bf16 %v306_v8, %v322_v16  ;;  %v307_v22 = vld [vmem:[%s2097_s0 + $0x70] sm:$0xff]  ;;  %v378_v25 = vld [vmem:[%s1692_s23 + $0x150] sm:$0xff] }
  0xa1   : > { %494 = vxpose.xlu1.b32.cont [9/11] (short) (narrow) %v333_v0, 56  ;;  %v305_v0 = vld [vmem:[%s2097_s0 + $0x60] sm:$0xff]  ;;  %1111 = vmatprep.subr.bf16.mxu1 %v1110_v51  ;;  %v376_v24 = vld [vmem:[%s1692_s23 + $0x140] sm:$0xff]  ;;  %v323_v26 = vld [vmem:[%s2097_s0 + $0xf0] sm:$0xff] }
  0xa2   : > { %1263 = vxpose.xlu0.b32.cont [9/16] (narrow) %v1262_v14, 56  ;;  %1161 = vmatpush1.bf16.msra.mxu0 %v1160_v58  ;;  %v1270_v11 = vpack.i.bf16 %v305_v0, %v321_v4  ;;  %v374_v14 = vld [vmem:[%s1692_s23 + $0x130] sm:$0xff]  ;;  %v383_v28 = vld [vmem:[%s1692_s23 + $0x178] sm:$0xff]  ;;  %v1124_v29 = vpack.c.bf16 %v378_v25, %v376_v24  ;;  %v1274_v30 = vpack.i.bf16 %v307_v22, %v323_v26  ;;  %v380_v33 = vld [vmem:[%s1692_s23 + $0x160] sm:$0xff] }
  0xa3   : > { %1163 = vmatprep.subr.bf16.mxu0 %v1162_v60  ;;  %v1120_v19 = vpack.c.bf16 %v374_v14, %v372_v13  ;;  %v1126_v32 = vpack.c.bf16 %v383_v28, %v381_v27  ;;  %v382_v34 = vld [vmem:[%s1692_s23 + $0x170] sm:$0xff]  ;;  %v385_v36 = vld [vmem:[%s1692_s23 + $0x188] sm:$0xff]  ;;  %v387_v37 = vld [vmem:[%s1692_s23 + $0x198] sm:$0xff] }
  0xa4   : > { %1113 = vmatpush1.bf16.msra.mxu1 %v1112_v59  ;;  %v324_v35 = vld [vmem:[%s2097_s0 + $0xf8] sm:$0xff]  ;;  %v1128_v38 = vpack.c.bf16 %v382_v34, %v380_v33  ;;  %v389_v43 = vld [vmem:[%s1692_s23 + $0x1a8] sm:$0xff]  ;;  %v391_v44 = vld [vmem:[%s1692_s23 + $0x1b8] sm:$0xff] }
  0xa5   : > { %495 = vxpose.xlu1.b32.cont [10/11] (short) (narrow) %v334_v23, 56  ;;  %1115 = vmatprep.subr.bf16.mxu1 %v1114_v1  ;;  %v1122_v23 = vpack.c.bf16 %v379_v18, %v377_v17  ;;  %v384_v41 = vld [vmem:[%s1692_s23 + $0x180] sm:$0xff]  ;;  %v386_v42 = vld [vmem:[%s1692_s23 + $0x190] sm:$0xff]  ;;  %v1134_v46 = vpack.c.bf16 %v391_v44, %v389_v43  ;;  %v393_v49 = vld [vmem:[%s1692_s23 + $0x1c8] sm:$0xff] }
  0xa6   : > { %1265 = vxpose.xlu0.b32.cont [10/16] (narrow) %v1264_v31, 56  ;;  %1165 = vmatpush1.bf16.msra.mxu0 %v1164_v7  ;;  %v308_v31 = vld [vmem:[%s2097_s0 + $0x78] sm:$0xff]  ;;  %v1132_v45 = vpack.c.bf16 %v386_v42, %v384_v41  ;;  %v397_v55 = vld [vmem:[%s1692_s23 + $0x1e8] sm:$0xff]  ;;  %v399_v56 = vld [vmem:[%s1692_s23 + $0x1f8] sm:$0xff] }
  0xa7   : > { %667 = vmatprep.subr.mxu0 %v421_v15  ;;  %v1276_v39 = vpack.i.bf16 %v308_v31, %v324_v35  ;;  %v388_v47 = vld [vmem:[%s1692_s23 + $0x1a0] sm:$0xff]  ;;  %v390_v48 = vld [vmem:[%s1692_s23 + $0x1b0] sm:$0xff]  ;;  %v1142_v58 = vpack.c.bf16 %v399_v56, %v397_v55 }
  0xa8   : > { %1117 = vmatpush1.bf16.msra.mxu1 %v1116_v9  ;;  %v1136_v51 = vpack.c.bf16 %v390_v48, %v388_v47  ;;  %v392_v53 = vld [vmem:[%s1692_s23 + $0x1c0] sm:$0xff]  ;;  %v394_v54 = vld [vmem:[%s1692_s23 + $0x1d0] sm:$0xff] }
  0xa9   : > { %496 = vxpose.xlu1.b32.end [11/11] (short) (narrow) %v335_v40, 56  ;;  %1119 = vmatprep.subr.bf16.mxu1 %v1118_v12  ;;  %v1130_v40 = vpack.c.bf16 %v387_v37, %v385_v36  ;;  %v1140_v57 = vpack.c.bf16 %v394_v54, %v392_v53  ;;  %v396_v59 = vld [vmem:[%s1692_s23 + $0x1e0] sm:$0xff]  ;;  %v398_v60 = vld [vmem:[%s1692_s23 + $0x1f0] sm:$0xff] }
  0xaa   : > { %1267 = vxpose.xlu0.b32.cont [11/16] (narrow) %v1266_v50, 56  ;;  %668 = vmatpush1.msra.mxu0 %v420_v20  ;;  %v395_v50 = vld [vmem:[%s1692_s23 + $0x1d8] sm:$0xff]  ;;  %v1144_v61 = vpack.c.bf16 %v398_v60, %v396_v59  ;;  %s254_s23 = scalar_lea.vmem [#allocation7], %s1065_s20  ;;  %s2025_s20 = scalar_lea.vmem [#allocation8], %s1182_s17 }
  0xab   : > { %v1138_v52 = vpack.c.bf16 %v395_v50, %v393_v49  ;;  %s937_s21 = sshll.u32 %s2025_s20, 4  ;;  %s2047_s21 = int_to_ptr.vmem [resolvable:$true] %s937_s21 }
  0xac   : > { %1121 = vmatpush1.bf16.msra.mxu1 %v1120_v19  ;;  %s1407_s14 = scalar_lea.vmem %s2047_s21, 1792  ;;  %p1414_p2 = scmp.lt.s32.totalorder %s2047_s21, %s1412_s22 }
  0xad   : > { %1123 = vmatprep.subr.bf16.mxu1 %v1122_v23  ;;  %p1408_p0 = scmp.ne.s32.totalorder %s2047_s21, %s1407_s14  ;;  %p1415_p5 = scmp.lt.s32.totalorder %s1413_s10, %s1407_s14 }
  0xae   : > { %1269 = vxpose.xlu0.b32.cont [12/16] (narrow) %v1268_v63, 56 }
  0xaf   : > { %p1409_p6 = pnand %p1408_p0, %p2126_p4  ;;  %p1416_p8 = por %p1415_p5, %p1414_p2 }
  0xb0   : > { %1125 = vmatpush1.bf16.msra.mxu1 %v1124_v29 }
  0xb1   : > { %1127 = vmatprep.subr.bf16.mxu1 %v1126_v32  ;;  %p1410_p10 = pneg %p1409_p6 }
  0xb2   : > { %1271 = vxpose.xlu0.b32.cont [13/16] (narrow) %v1270_v11, 56 }
  0xb3   : > { %p1417_p9 = pnand %p1416_p8, %p1410_p10 }
  0xb4   : > { %1129 = vmatpush1.bf16.msra.mxu1 %v1128_v38 }
  0xb5   : > { %1131 = vmatprep.subr.bf16.mxu1 %v1130_v40 }
  0xb6   : > { %1273 = vxpose.xlu0.b32.cont [14/16] (narrow) %v1272_v21, 56 }
  0xb8   : > { %1133 = vmatpush1.bf16.msra.mxu1 %v1132_v45 }
  0xb9   : > { %1135 = vmatprep.subr.bf16.mxu1 %v1134_v46 }
  0xba   : > { %1275 = vxpose.xlu0.b32.cont [15/16] (narrow) %v1274_v30, 56 }
  0xbc   : > { %1137 = vmatpush1.bf16.msra.mxu1 %v1136_v51 }
  0xbd   : > { %1139 = vmatprep.subr.bf16.mxu1 %v1138_v52 }
  0xbe   : > { %1277 = vxpose.xlu0.b32.end [16/16] (narrow) %v1276_v39, 56 }
  0xc0   : > { %1141 = vmatpush1.bf16.msra.mxu1 %v1140_v57 }
  0xc1   : > { %1143 = vmatprep.subr.bf16.mxu1 %v1142_v58 }
  0xc4   : > { %1145 = vmatpush1.bf16.msra.mxu1 %v1144_v61 }
 0x101   : > { %v502_v62 = vpop.trf.xlu1 }
 0x102   : > { %1067 = vmatmul.mubr.msk.f32.vlgmr.msra.gmra.mrb[0].mxu0 %vm518_vm0, %v502_v62  ;;  %v1278_v63 = vpop.trf.xlu0 }
 0x103   : > { %717 = vmatprep.mubr.f32.mxu0 %v1485_v10  ;;  %v1279_v0 = vunpack.i.l.bf16 %v1278_v63  ;;  %v1282_v1 = vunpack.i.h.bf16 %v1278_v63 }
 0x105   : > { %v503_v2 = vpop.trf.xlu1  ;;  %604 = vmatprep.mubr.f32.mxu1 %v1279_v0 }
 0x106   : > { %1068 = vmatmul.mubr.msk.f32.gmra.mrb[2].mxu0 %vm518_vm0, %v503_v2  ;;  %v1283_v3 = vpop.trf.xlu0  ;;  %605 = vmatmul.mubr.f32.vlgmr.msra.gmra.mrb[0].mxu1 %v1282_v1 }
 0x107   : > { %723 = vmatprep.mubr.f32.mxu0 %v1485_v10  ;;  %v1284_v4 = vunpack.i.l.bf16 %v1283_v3  ;;  %v1287_v5 = vunpack.i.h.bf16 %v1283_v3 }
 0x109   : > { %v504_v6 = vpop.trf.xlu1  ;;  %610 = vmatprep.mubr.f32.mxu1 %v1284_v4 }
 0x10a   : > { %1069 = vmatmul.mubr.msk.f32.gmra.mrb[4].mxu0 %vm518_vm0, %v504_v6  ;;  %v1288_v7 = vpop.trf.xlu0  ;;  %611 = vmatmul.mubr.f32.gmra.mrb[2].mxu1 %v1287_v5 }
 0x10b   : > { %729 = vmatprep.mubr.f32.mxu0 %v1485_v10  ;;  %v1289_v8 = vunpack.i.l.bf16 %v1288_v7  ;;  %v1292_v9 = vunpack.i.h.bf16 %v1288_v7 }
 0x10d   : > { %v505_v11 = vpop.trf.xlu1  ;;  %616 = vmatprep.mubr.f32.mxu1 %v1289_v8 }
 0x10e   : > { %1070 = vmatmul.mubr.msk.f32.gmra.mrb[6].mxu0 %vm518_vm0, %v505_v11  ;;  %v1293_v12 = vpop.trf.xlu0  ;;  %617 = vmatmul.mubr.f32.gmra.mrb[4].mxu1 %v1292_v9 }
 0x10f   : > { %735 = vmatprep.mubr.f32.mxu0 %v1485_v10  ;;  %v1294_v13 = vunpack.i.l.bf16 %v1293_v12  ;;  %v1297_v14 = vunpack.i.h.bf16 %v1293_v12 }
 0x111   : > { %v506_v15 = vpop.trf.xlu1  ;;  %622 = vmatprep.mubr.f32.mxu1 %v1294_v13 }
 0x112   : > { %1071 = vmatmul.mubr.msk.f32.gmra.mrb[8].mxu0 %vm518_vm0, %v506_v15  ;;  %v1298_v16 = vpop.trf.xlu0  ;;  %623 = vmatmul.mubr.f32.gmra.mrb[6].mxu1 %v1297_v14 }
 0x113   : > { %741 = vmatprep.mubr.f32.mxu0 %v1485_v10  ;;  %v1299_v17 = vunpack.i.l.bf16 %v1298_v16  ;;  %v1302_v18 = vunpack.i.h.bf16 %v1298_v16 }
 0x115   : > { %v507_v19 = vpop.trf.xlu1  ;;  %628 = vmatprep.mubr.f32.mxu1 %v1299_v17 }
 0x116   : > { %1072 = vmatmul.mubr.msk.f32.gmra.mrb[10].mxu0 %vm518_vm0, %v507_v19  ;;  %v1303_v20 = vpop.trf.xlu0  ;;  %629 = vmatmul.mubr.f32.gmra.mrb[8].mxu1 %v1302_v18 }
 0x117   : > { %747 = vmatprep.mubr.f32.mxu0 %v1485_v10  ;;  %v1304_v21 = vunpack.i.l.bf16 %v1303_v20  ;;  %v1307_v22 = vunpack.i.h.bf16 %v1303_v20 }
 0x119   : > { %v508_v23 = vpop.trf.xlu1  ;;  %634 = vmatprep.mubr.f32.mxu1 %v1304_v21 }
 0x11a   : > { %1073 = vmatmul.mubr.msk.f32.gmra.mrb[12].mxu0 %vm518_vm0, %v508_v23  ;;  %v1308_v24 = vpop.trf.xlu0  ;;  %635 = vmatmul.mubr.f32.gmra.mrb[10].mxu1 %v1307_v22 }
 0x11b   : > { %v1312_v25 = vunpack.i.h.bf16 %v1308_v24  ;;  %v1309_v26 = vunpack.i.l.bf16 %v1308_v24 }
 0x11d   : > { %640 = vmatprep.mubr.f32.mxu1 %v1309_v26 }
 0x11e   : > { %641 = vmatmul.mubr.f32.gmra.mrb[12].mxu1 %v1312_v25 }
 0x1d5   : > { %v713_v27 = vpop.f32.mrb[0].mxu0 }
 0x1d6   : > { %v715_v28 = vpop.f32.mrb[1].mxu0 }
 0x1d9   : > { %v719_v29 = vpop.f32.mrb[2].mxu0  ;;  %v606_v30 = vpop.f32.mrb[0].mxu1 }
 0x1da   : > { %v721_v31 = vpop.f32.mrb[3].mxu0  ;;  %v1937_v32 = vadd.f32 %v713_v27, %v606_v30  ;;  %v608_v10 = vpop.f32.mrb[1].mxu1 }
 0x1db   : > { %v1939_v33 = vadd.f32 %v715_v28, %v608_v10 }
 0x1dd   : > { %v725_v34 = vpop.f32.mrb[4].mxu0  ;;  %v612_v35 = vpop.f32.mrb[2].mxu1 }
 0x1de   : > { %v727_v36 = vpop.f32.mrb[5].mxu0  ;;  %v720_v37 = vadd.f32 %v719_v29, %v612_v35  ;;  %v614_v38 = vpop.f32.mrb[3].mxu1 }
 0x1df   : > { %v1941_v39 = vadd.f32 %v721_v31, %v614_v38 }
 0x1e0   : > { %v754_v40 = vadd.f32 %v720_v37, %v1937_v32 }
 0x1e1   : > { %v731_v41 = vpop.f32.mrb[6].mxu0  ;;  %v768_v42 = vadd.f32 %v1941_v39, %v1939_v33  ;;  %v618_v43 = vpop.f32.mrb[4].mxu1 }
 0x1e2   : > { %v733_v44 = vpop.f32.mrb[7].mxu0  ;;  %v726_v45 = vadd.f32 %v725_v34, %v618_v43  ;;  %v620_v46 = vpop.f32.mrb[5].mxu1 }
 0x1e3   : > { %v1946_v47 = vadd.f32 %v727_v36, %v620_v46 }
 0x1e4   : > { %v755_v48 = vadd.f32 %v754_v40, %v726_v45 }
 0x1e5   : > { %v737_v49 = vpop.f32.mrb[8].mxu0  ;;  %v769_v50 = vadd.f32 %v768_v42, %v1946_v47  ;;  %v624_v51 = vpop.f32.mrb[6].mxu1 }
 0x1e6   : > { %v739_v52 = vpop.f32.mrb[9].mxu0  ;;  %v732_v53 = vadd.f32 %v731_v41, %v624_v51  ;;  %v626_v54 = vpop.f32.mrb[7].mxu1 }
 0x1e7   : > { %v734_v55 = vadd.f32 %v733_v44, %v626_v54 }
 0x1e8   : > { %v756_v56 = vadd.f32 %v755_v48, %v732_v53 }
 0x1e9   : > { %v743_v57 = vpop.f32.mrb[10].mxu0  ;;  %v770_v58 = vadd.f32 %v769_v50, %v734_v55  ;;  %v630_v59 = vpop.f32.mrb[8].mxu1 }
 0x1ea   : > { %v745_v60 = vpop.f32.mrb[11].mxu0  ;;  %v738_v61 = vadd.f32 %v737_v49, %v630_v59  ;;  %v632_v62 = vpop.f32.mrb[9].mxu1 }
 0x1eb   : > { %v740_v63 = vadd.f32 %v739_v52, %v632_v62 }
 0x1ec   : > { %v757_v0 = vadd.f32 %v756_v56, %v738_v61 }
 0x1ed   : > { %v749_v1 = vpop.f32.mrb[12].mxu0  ;;  %v771_v2 = vadd.f32 %v770_v58, %v740_v63  ;;  %v636_v3 = vpop.f32.mrb[10].mxu1 }
 0x1ee   : > { %v751_v4 = vpop.f32.mrb[13].mxu0  ;;  %v744_v5 = vadd.f32 %v743_v57, %v636_v3  ;;  %v638_v6 = vpop.f32.mrb[11].mxu1 }
 0x1ef   : > { %v746_v7 = vadd.f32 %v745_v60, %v638_v6 }
 0x1f0   : > { %v758_v8 = vadd.f32 %v757_v0, %v744_v5 }
 0x1f1   : > { %v772_v9 = vadd.f32 %v771_v2, %v746_v7  ;;  %v642_v11 = vpop.f32.mrb[12].mxu1 }
 0x1f2   : > { %v750_v12 = vadd.f32 %v749_v1, %v642_v11  ;;  %v644_v13 = vpop.f32.mrb[13].mxu1 }
 0x1f3   : > { %v752_v14 = vadd.f32 %v751_v4, %v644_v13 }
 0x1f4   : > { %v760_v15 = vsel %vm759_vm1, %v750_v12, 0.0 }
 0x1f5   : > { %v761_v16 = vadd.f32 %v760_v15, %v758_v8  ;;  %v773_v17 = vsel %vm759_vm1, %v752_v14, 0.0 }
 0x1f6   : > { %v774_v18 = vadd.f32 %v773_v17, %v772_v9 }
 0x1f7   : > { %v762_v19 = vrot.slane %v761_v16, 4 }
 0x1f8   : > { %v775_v20 = vrot.slane %v774_v18, 4 }
 0x1f9   : > { %v763_v21 = vadd.f32 %v762_v19, %v761_v16 }
 0x1fa   : > { %v776_v22 = vadd.f32 %v775_v20, %v774_v18 }
 0x1fb   : > { %v764_v23 = vrot.slane %v763_v21, 2 }
 0x1fc   : > { %v777_v24 = vrot.slane %v776_v22, 2 }
 0x1fd   : > { %v765_v25 = vadd.f32 %v764_v23, %v763_v21  ;;  %v859_v23 = vlaneseq }
 0x1fe   : > { %v778_v26 = vadd.f32 %v777_v24, %v776_v22 }
 0x1ff   : > { %v766_v27 = vrot.slane %v765_v25, 1 }
 0x200   : > { %v779_v28 = vrot.slane %v778_v26, 1 }
 0x201   : > { %v767_v29 = vadd.f32 %v766_v27, %v765_v25  ;;  %v860_v27 = vshrl.u32 %v859_v23, 7 }
 0x202   : > { %v780_v30 = vadd.f32 %v779_v28, %v778_v26 }
 0x203   : > { %v781_v31 = vmul.f32 0.020408163, %v767_v29  ;;  %v861_v29 = vsub.s32 0, %v860_v27 }
 0x204   : > { %v782_v10 = vmul.f32 0.020408163, %v780_v30  ;;  %v857_v30 = vld [vmem:[%s1702_s30] sm:$0x3]  ;;  %s1081_s30 = sshll.u32 %s1536_s19, 8 }
 0x205   : > { %v1952_v34 = vsub.f32 %v1937_v32, %v781_v31  ;;  %v1954_v35 = vsub.f32 %v720_v37, %v781_v31  ;;  %v1956_v36 = vsub.f32 %v726_v45, %v781_v31  ;;  %v1958_v38 = vsub.f32 %v732_v53, %v781_v31  ;;  %s2045_s13 = scalar_lea.hbm %s2101_s4, %s1081_s30 }
 0x206   : > { %v1960_v40 = vsub.f32 %v738_v61, %v781_v31  ;;  %v1962_v41 = vsub.f32 %v744_v5, %v781_v31  ;;  %v1964_v42 = vsub.f32 %v750_v12, %v781_v31  ;;  %v1967_v43 = vsub.f32 %v1939_v33, %v782_v10  ;;  %v883_v31 = vld [vmem:[%s254_s23] sm:$0x3] }
 0x207   : > { %v797_v44 = vmul.f32 %v1952_v34, %v1952_v34  ;;  %v799_v32 = vmul.f32 %v1954_v35, %v1954_v35  ;;  %v801_v37 = vmul.f32 %v1956_v36, %v1956_v36  ;;  %v1976_v45 = vsub.f32 %v1941_v39, %v782_v10 }
 0x208   : > { %v1979_v48 = vsub.f32 %v1946_v47, %v782_v10  ;;  %v1981_v49 = vsub.f32 %v734_v55, %v782_v10  ;;  %v1983_v33 = vsub.f32 %v740_v63, %v782_v10  ;;  %v1985_v50 = vsub.f32 %v746_v7, %v782_v10 }
 0x209   : > { %v811_v46 = vadd.f32 %v799_v32, %v797_v44  ;;  %v1987_v51 = vsub.f32 %v752_v14, %v782_v10  ;;  %v798_v52 = vmul.f32 %v1967_v43, %v1967_v43  ;;  %v803_v53 = vmul.f32 %v1958_v38, %v1958_v38 }
 0x20a   : > { %v800_v54 = vmul.f32 %v1976_v45, %v1976_v45  ;;  %v805_v47 = vmul.f32 %v1960_v40, %v1960_v40  ;;  %v802_v56 = vmul.f32 %v1979_v48, %v1979_v48  ;;  %v809_v58 = vmul.f32 %v1964_v42, %v1964_v42 }
 0x20b   : > { %v812_v39 = vadd.f32 %v811_v46, %v801_v37  ;;  %v807_v59 = vmul.f32 %v1962_v41, %v1962_v41  ;;  %v804_v61 = vmul.f32 %v1981_v49, %v1981_v49  ;;  %v806_v0 = vmul.f32 %v1983_v33, %v1983_v33 }
 0x20c   : > { %v824_v57 = vadd.f32 %v800_v54, %v798_v52  ;;  %v816_v2 = vsel %vm759_vm1, %v809_v58, 0.0  ;;  %v810_v3 = vmul.f32 %v1987_v51, %v1987_v51  ;;  %v808_v5 = vmul.f32 %v1985_v50, %v1985_v50 }
 0x20d   : > { %v813_v55 = vadd.f32 %v812_v39, %v803_v53  ;;  %v865_v10 = vsub.s32 1, %v860_v27  ;;  %v862_v44 = vrot.slane %v857_v30, %v861_v29  ;;  %v888_v37 = vrot.slane %v883_v31, %v861_v29 }
 0x20e   : > { %v825_v62 = vadd.f32 %v824_v57, %v802_v56  ;;  %v829_v9 = vsel %vm759_vm1, %v810_v3, 0.0 }
 0x20f   : > { %v814_v60 = vadd.f32 %v813_v55, %v805_v47  ;;  %v866_v56 = vrot.slane %v857_v30, %v865_v10 }
 0x210   : > { %v826_v1 = vadd.f32 %v825_v62, %v804_v61 }
 0x211   : > { %v815_v63 = vadd.f32 %v814_v60, %v807_v59 }
 0x212   : > { %v827_v6 = vadd.f32 %v826_v1, %v806_v0 }
 0x213   : > { %v817_v4 = vadd.f32 %v816_v2, %v815_v63 }
 0x214   : > { %v828_v8 = vadd.f32 %v827_v6, %v808_v5 }
 0x215   : > { %v818_v7 = vrot.slane %v817_v4, 4 }
 0x216   : > { %v830_v12 = vadd.f32 %v829_v9, %v828_v8 }
 0x217   : > { %v819_v11 = vadd.f32 %v818_v7, %v817_v4 }
 0x218   : > { %v831_v14 = vrot.slane %v830_v12, 4 }
 0x219   : > { %v820_v13 = vrot.slane %v819_v11, 2 }
 0x21a   : > { %v832_v16 = vadd.f32 %v831_v14, %v830_v12 }
 0x21b   : > { %v821_v15 = vadd.f32 %v820_v13, %v819_v11 }
 0x21c   : > { %v833_v18 = vrot.slane %v832_v16, 2 }
 0x21d   : > { %v822_v17 = vrot.slane %v821_v15, 1 }
 0x21e   : > { %v834_v20 = vadd.f32 %v833_v18, %v832_v16 }
 0x21f   : > { %v823_v19 = vadd.f32 %v822_v17, %v821_v15 }
 0x220   : > { %v835_v22 = vrot.slane %v834_v20, 1 }
 0x221   : > { %v837_v21 = vmul.f32 0.020408163, %v823_v19 }
 0x222   : > { %v836_v25 = vadd.f32 %v835_v22, %v834_v20 }
 0x223   : > { %v839_v24 = vadd.f32 0.001, %v837_v21 }
 0x224   : > { %v838_v26 = vmul.f32 0.020408163, %v836_v25 }
 0x225   : > { %1313 = vrsqrt.f32 %v839_v24 }
 0x226   : > { %v840_v28 = vadd.f32 0.001, %v838_v26 }
 0x228   : > { %1315 = vrsqrt.f32 %v840_v28 }
 0x22f   : > { %v1314_v32 = vpop.eup %1313 }
 0x230   : > { %v843_v46 = vmul.f32 %v1314_v32, %v1952_v34  ;;  %v845_v52 = vmul.f32 %v1314_v32, %v1954_v35  ;;  %v847_v53 = vmul.f32 %v1314_v32, %v1956_v36  ;;  %v849_v39 = vmul.f32 %v1314_v32, %v1958_v38 }
 0x231   : > { %v851_v54 = vmul.f32 %v1314_v32, %v1960_v40  ;;  %v853_v47 = vmul.f32 %v1314_v32, %v1962_v41  ;;  %v855_v55 = vmul.f32 %v1314_v32, %v1964_v42  ;;  %v892_v35 = vrot.slane %v883_v31, %v865_v10 }
 0x232   : > { %v869_v57 = vmul.f32 %v862_v44, %v843_v46  ;;  %v871_v58 = vmul.f32 %v862_v44, %v845_v52  ;;  %v873_v59 = vmul.f32 %v862_v44, %v847_v53  ;;  %v875_v60 = vmul.f32 %v862_v44, %v849_v39  ;;  %v1316_v61 = vpop.eup %1315 }
 0x233   : > { %v877_v62 = vmul.f32 %v862_v44, %v851_v54  ;;  %v879_v34 = vmul.f32 %v862_v44, %v853_v47  ;;  %v881_v63 = vmul.f32 %v862_v44, %v855_v55  ;;  %v844_v42 = vmul.f32 %v1316_v61, %v1967_v43 }
 0x234   : > { %v895_v0 = vadd.f32 %v888_v37, %v869_v57  ;;  %v897_v36 = vadd.f32 %v888_v37, %v871_v58  ;;  %v899_v38 = vadd.f32 %v888_v37, %v873_v59  ;;  %v901_v1 = vadd.f32 %v888_v37, %v875_v60 }
 0x235   : > { %v903_v40 = vadd.f32 %v888_v37, %v877_v62  ;;  %v905_v2 = vadd.f32 %v888_v37, %v879_v34  ;;  %v907_v41 = vadd.f32 %v888_v37, %v881_v63  ;;  %v846_v3 = vmul.f32 %v1316_v61, %v1976_v45 }
 0x236   : > { %909 = vst [vmem:[%s2025_s20] sm:$0xff] %v895_v0  ;;  %911 = vst [vmem:[%s2025_s20 + $0x10] sm:$0xff] %v897_v36  ;;  %v848_v4 = vmul.f32 %v1316_v61, %v1979_v48  ;;  %v850_v43 = vmul.f32 %v1316_v61, %v1981_v49  ;;  %v852_v5 = vmul.f32 %v1316_v61, %v1983_v33 }
 0x237   : > { %913 = vst [vmem:[%s2025_s20 + $0x20] sm:$0xff] %v899_v38  ;;  %915 = vst [vmem:[%s2025_s20 + $0x30] sm:$0xff] %v901_v1  ;;  %v854_v6 = vmul.f32 %v1316_v61, %v1985_v50  ;;  %v856_v7 = vmul.f32 %v1316_v61, %v1987_v51  ;;  %v870_v8 = vmul.f32 %v866_v56, %v844_v42 }
 0x238   : > { %917 = vst [vmem:[%s2025_s20 + $0x40] sm:$0xff] %v903_v40  ;;  %919 = vst [vmem:[%s2025_s20 + $0x50] sm:$0xff] %v905_v2  ;;  %v872_v9 = vmul.f32 %v866_v56, %v846_v3  ;;  %v874_v45 = vmul.f32 %v866_v56, %v848_v4  ;;  %v876_v48 = vmul.f32 %v866_v56, %v850_v43 }
 0x239   : > { %921 = vst [vmem:[%s2025_s20 + $0x60] sm:$0x1] %v907_v41  ;;  %v878_v49 = vmul.f32 %v866_v56, %v852_v5  ;;  %v880_v33 = vmul.f32 %v866_v56, %v854_v6  ;;  %v882_v11 = vmul.f32 %v866_v56, %v856_v7  ;;  %v896_v12 = vadd.f32 %v892_v35, %v870_v8 }
 0x23a   : > { %v898_v50 = vadd.f32 %v892_v35, %v872_v9  ;;  %v900_v51 = vadd.f32 %v892_v35, %v874_v45  ;;  %v902_v13 = vadd.f32 %v892_v35, %v876_v48 }
 0x23b   : > { %v904_v14 = vadd.f32 %v892_v35, %v878_v49  ;;  %v906_v15 = vadd.f32 %v892_v35, %v880_v33  ;;  %v908_v16 = vadd.f32 %v892_v35, %v882_v11  ;;  %910 = vst [vmem:[%s2025_s20 + $0x8] sm:$0xff] %v896_v12 }
 0x23c   : > { %912 = vst [vmem:[%s2025_s20 + $0x18] sm:$0xff] %v898_v50  ;;  %914 = vst [vmem:[%s2025_s20 + $0x28] sm:$0xff] %v900_v51 }
 0x23d   : > { %916 = vst [vmem:[%s2025_s20 + $0x38] sm:$0xff] %v902_v13  ;;  %918 = vst [vmem:[%s2025_s20 + $0x48] sm:$0xff] %v904_v14 }
 0x23e   : > { %920 = vst [vmem:[%s2025_s20 + $0x58] sm:$0xff] %v906_v15  ;;  %922 = vst [vmem:[%s2025_s20 + $0x68] sm:$0x1] %v908_v16 }
 0x23f   : > { %1420 = shalt.err (!%p1417_p9)
}
 0x240   : > { %s1421_s5 = scalar_lea.hbm %s2045_s13, 1792  ;;  %s1425_s25 = scalar_lea.hbm %s2101_s4, 16128 }
 0x241   : > { %p1422_p11 = scmp.ne.s32.totalorder %s2045_s13, %s1421_s5  ;;  %p1426_p3 = scmp.lt.u32.totalorder %s2045_s13, %s2101_s4 }
 0x242   : > { %p1427_p13 = scmp.lt.u32.totalorder %s1425_s25, %s1421_s5  ;;  %p1429_p0 = scmp.lt.u32.totalorder %s1421_s5, %s2045_s13 }
 0x243   : > { %p1423_p7 = pnand %p1422_p11, %p2126_p4 }
 0x244   : > { %p1428_p12 = por %p1427_p13, %p1426_p3 }
 0x245   : > { %p1424_p1 = pneg %p1423_p7 }
 0x246   : > { %p1430_p6 = por %p1429_p0, %p1428_p12 }
 0x248   : > { %p1431_p10 = pnand %p1430_p6, %p1424_p1 }
 0x24a   : > { %1434 = shalt.err (!%p1431_p10)
}
 0x24b   : > { %s1487_s7 = smov 256   ;;  %s1488_s8 = smov 2304  }
 0x24c   : > { %s1489_s11 = smov 16  }
 0x24d   : > { %1189 = dma.vmem_to_hbm [thread:$0]  (%p2126_p4), %s2047_s21, 1792, %s2045_s13, %s924_s24, %s1487_s7, %s1488_s8, %s1489_s11  }
 0x24e PF: > { %p1206_p2 = scmp.ge.s32.totalorder %s1477_s18, 2  ;;  %s952_s23 = sand.u32 1, %s1465_s15  }
 0x24f   : > { %p2127_p5 = scmp.ne.s32.totalorder %s2116_s27, 0  ;;  %s953_s17 = scalar_lea.sflag [#allocation4], %s952_s23 }
 0x251   : > { %p1202_p8 = pnand %p1206_p2, %p2127_p5 }
 0x253   : > { %1460 = dma.done.wait (!%p1202_p8), %s953_s17, 1792  }
 0x254   : > { %1462 = vsyncadd (!%p1202_p8), %s953_s17, 4294965504  ;;  %s2128_s18 = sld [smem:[#allocation13_spill]]  ;;  %s2129_s20 = sld [smem:[#allocation12_spill]] }
 0x255   : > { %s2130_s17 = sld [smem:[#allocation14_spill]]  ;;  %s2131_s15 = smov %s1469_s16 }
 0x25a   : > { %p20_p9 = scmp.ge.s32.totalorder %s2128_s18, 11   ;;  %s2132_s16 = smov %s2129_s20 }
 0x25c   :  { %22 = sbr.rel (!%p20_p9) target bundleno = 10 (0xa), region = 105 }
 0x263   :  { %958 = vsyncpa [#allocation3], 1 }
 0x264   :  { %960 = vsyncpa [#allocation3 + $0x1], 1 }
 0x265   :  { %961 = vsyncpa [#allocation6], 1 }
 0x266   :  { %963 = vsyncpa [#allocation6 + $0x1], 1 }
 0x267   :  { %964 = vsyncpa [#allocation4], 1 }
 0x268   :  { %966 = vsyncpa [#allocation4 + $0x1], 1 }

</bundles_post_ra>
